<compile_context>
chip_gen: v6e
topology: v6e:2x2x1
jax: 0.10.0
libtpu: 0.0.40
codegen_flags: <defaults>
</compile_context>

<pallas_src>
import functools

import jax
import jax.numpy as jnp
from jax.experimental import pallas as pl
from jax.experimental.pallas import tpu as pltpu


def autoencoder_kernel(x_ref, wg_ref, bg_ref, wh_ref, bh_ref, o_ref):
    # In-kernel f32 -> bf16 cast of the activation tile (VPU, hidden under MXU/DMA).
    x = x_ref[...].astype(wg_ref.dtype)
    # Encoder matmul on MXU (bf16 x bf16 -> f32 accumulation).
    hidden = jnp.dot(x, wg_ref[...], preferred_element_type=jnp.float32)
    # Bias add + sigmoid in f32 (VPU/EUP slots are idle while the MXU runs;
    # exact sigmoid kept for accuracy — kernel is HBM-bound, not VALU-bound).
    hidden = jax.nn.sigmoid(hidden + bg_ref[...])          # (TB, K) + (1, K)
    # Decoder matmul; downcast hidden to the weight dtype (bf16) for the MXU.
    out = jnp.dot(hidden.astype(wh_ref.dtype), wh_ref[...],
                  preferred_element_type=jnp.float32)
    o_ref[...] = (out + bh_ref[...]).astype(o_ref.dtype)   # (TB, Q) + (1, Q)


def _round_up(v, m):
    return -(-v // m) * m


def _pick_batch_tile(batch, tb_max=512):
    """Batch tile: multiple of 16, >=2 grid steps when possible, <= tb_max."""
    if batch <= 16:
        return batch                       # single tile == full array dim (legal)
    tb = min(tb_max, _round_up(pl.cdiv(batch, 2), 16))
    return min(tb, batch)


@functools.partial(jax.jit,
                   static_argnames=("compute_dtype", "out_dtype", "tb_max"))
def autoencoder_forward(x, w_g, b_g, w_h, b_h, *,
                        compute_dtype=jnp.bfloat16, out_dtype=None, tb_max=512):
    """x: (B, Q) f32; w_g: (Q, K); b_g: (1, K); w_h: (K, Q); b_h: (1, Q).

    Weights are expected already in `compute_dtype` (cast once at model-build
    time); biases already in f32. `astype` below is a no-op in that case.
    """
    B, Q = x.shape
    K = w_g.shape[1]
    out_dtype = x.dtype if out_dtype is None else out_dtype

    wgc = w_g.astype(compute_dtype)
    whc = w_h.astype(compute_dtype)
    bgc = b_g.astype(jnp.float32)
    bhc = b_h.astype(jnp.float32)

    tb = _pick_batch_tile(B, tb_max)
    num_tiles = pl.cdiv(B, tb)             # partial last tile handled by Pallas

    return pl.pallas_call(
        autoencoder_kernel,
        out_shape=jax.ShapeDtypeStruct((B, Q), out_dtype),
        grid_spec=pltpu.PrefetchScalarGridSpec(
            num_scalar_prefetch=0,
            grid=(num_tiles,),
            in_specs=[
                pl.BlockSpec((tb, Q), lambda i: (i, 0)),   # x tile (pipelined)
                pl.BlockSpec((Q, K), lambda i: (0, 0)),    # W_g resident
                pl.BlockSpec((1, K), lambda i: (0, 0)),    # b_g resident
                pl.BlockSpec((K, Q), lambda i: (0, 0)),    # W_h resident
                pl.BlockSpec((1, Q), lambda i: (0, 0)),    # b_h resident
            ],
            out_specs=pl.BlockSpec((tb, Q), lambda i: (i, 0)),
        ),
        compiler_params=pltpu.CompilerParams(
            # Batch tiles are independent -> megacore sharding on v7x.
            dimension_semantics=("parallel",),
            # Working set is < 4 MiB even at tb=512; leave VMEM headroom.
            vmem_limit_bytes=32 * 1024 * 1024,
        ),
    )(x, wgc, bgc, whc, bhc)


def reference_forward(x, w_g, b_g, w_h, b_h):
    h = jax.nn.sigmoid(x @ w_g + b_g)
    return h @ w_h + b_h


if __name__ == "__main__":
    # Shapes consistent with the module: num_question=256, k=128.
    # B=500 exercises the partial-tile path (tb=256 -> tiles of 256 + 244) and
    # gives >=2 grid steps for the "parallel" axis.
    B, Q, K = 500, 256, 128
    key = jax.random.PRNGKey(0)
    kx, kwg, kbg, kwh, kbh = jax.random.split(key, 5)

    # PyTorch-style uniform(-1/sqrt(fan_in), 1/sqrt(fan_in)) init.
    lim_g = 1.0 / jnp.sqrt(jnp.float32(Q))
    lim_h = 1.0 / jnp.sqrt(jnp.float32(K))
    # Stored transposed relative to nn.Linear.weight: (in_features, out_features).
    w_g = jax.random.uniform(kwg, (Q, K), jnp.float32, -lim_g, lim_g)
    b_g = jax.random.uniform(kbg, (1, K), jnp.float32, -lim_g, lim_g)
    w_h = jax.random.uniform(kwh, (K, Q), jnp.float32, -lim_h, lim_h)
    b_h = jax.random.uniform(kbh, (1, Q), jnp.float32, -lim_h, lim_h)

    # Pre-cast weights ONCE (model-build time), per perf review.
    w_g_bf16 = w_g.astype(jnp.bfloat16)
    w_h_bf16 = w_h.astype(jnp.bfloat16)

    x = jax.random.uniform(kx, (B, Q), jnp.float32)  # user vectors in [0, 1)

    out = jax.block_until_ready(
        autoencoder_forward(x, w_g_bf16, b_g, w_h_bf16, b_h))

    # Reference 1: same bf16-quantized operands, f32 math -> should match closely.
    xb = x.astype(jnp.bfloat16).astype(jnp.float32)
    wgb = w_g_bf16.astype(jnp.float32)
    whb = w_h_bf16.astype(jnp.float32)
    hb = jax.nn.sigmoid(xb @ wgb + b_g).astype(jnp.bfloat16).astype(jnp.float32)
    ref_bf16 = jax.block_until_ready(hb @ whb + b_h)

    # Reference 2: full f32 forward (loose tolerance due to bf16 matmul inputs).
    ref_f32 = jax.block_until_ready(reference_forward(x, w_g, b_g, w_h, b_h))

    assert out.shape == (B, Q) and out.dtype == jnp.float32
    assert jnp.allclose(out, ref_bf16, atol=2e-3, rtol=2e-3), (
        jnp.max(jnp.abs(out - ref_bf16)))
    assert jnp.allclose(out, ref_f32, atol=5e-2, rtol=5e-2), (
        jnp.max(jnp.abs(out - ref_f32)))
    print("KERNEL_OK")
</pallas_src>

<mosaic_0001>
module attributes {stable_mosaic.version = 11 : i64} {
  func.func @autoencoder_kernel(%arg0: i32, %arg1: memref<256x256xf32, #tpu.memory_space<vmem>>, %arg2: memref<256x128xbf16, #tpu.memory_space<vmem>>, %arg3: memref<1x128xf32, #tpu.memory_space<vmem>>, %arg4: memref<128x256xbf16, #tpu.memory_space<vmem>>, %arg5: memref<1x256xf32, #tpu.memory_space<vmem>>, %arg6: memref<256x256xf32, #tpu.memory_space<vmem>>) attributes {dimension_semantics = [#tpu.dimension_semantics<parallel>], iteration_bounds = array<i64: 2>, scalar_prefetch = 0 : i64, scratch_operands = 0 : i64, tpu.core_type = #tpu.core_type<tc>, window_params = [{transform_indices = @transform_0, window_bounds = array<i64: 256, 256>}, {pipeline_mode = #tpu.pipeline_mode<synchronous>, transform_indices = @transform_1, window_bounds = array<i64: 256, 128>}, {pipeline_mode = #tpu.pipeline_mode<synchronous>, transform_indices = @transform_2, window_bounds = array<i64: 1, 128>}, {pipeline_mode = #tpu.pipeline_mode<synchronous>, transform_indices = @transform_3, window_bounds = array<i64: 128, 256>}, {pipeline_mode = #tpu.pipeline_mode<synchronous>, transform_indices = @transform_4, window_bounds = array<i64: 1, 256>}, {transform_indices = @transform_5, window_bounds = array<i64: 256, 256>}]} {
    %c0 = arith.constant 0 : index
    %c0_0 = arith.constant 0 : index
    %0 = vector.load %arg1[%c0, %c0_0] : memref<256x256xf32, #tpu.memory_space<vmem>>, vector<256x256xf32>
    %1 = arith.truncf %0 : vector<256x256xf32> to vector<256x256xbf16>
    %c0_1 = arith.constant 0 : index
    %c0_2 = arith.constant 0 : index
    %2 = vector.load %arg2[%c0_1, %c0_2] : memref<256x128xbf16, #tpu.memory_space<vmem>>, vector<256x128xbf16>
    %cst = arith.constant dense<0.000000e+00> : vector<256x128xf32>
    %3 = tpu.matmul %1, %2, %cst {dimension_numbers = #tpu.dot_dimension_numbers<[1], [0], [0], [1], [0, 0, 1, 1], [], []>} : vector<256x256xbf16>, vector<256x128xbf16>, vector<256x128xf32> -> vector<256x128xf32>
    %c0_3 = arith.constant 0 : index
    %c0_4 = arith.constant 0 : index
    %4 = vector.load %arg3[%c0_3, %c0_4] : memref<1x128xf32, #tpu.memory_space<vmem>>, vector<1x128xf32>
    %5 = vector.broadcast %4 : vector<1x128xf32> to vector<256x128xf32>
    %6 = arith.addf %3, %5 : vector<256x128xf32>
    %7 = arith.negf %6 : vector<256x128xf32>
    %8 = math.exp %7 : vector<256x128xf32>
    %cst_5 = arith.constant 1.000000e+00 : f32
    %9 = vector.broadcast %cst_5 : f32 to vector<256x128xf32>
    %10 = arith.addf %9, %8 : vector<256x128xf32>
    %11 = arith.divf %9, %10 : vector<256x128xf32>
    %12 = arith.truncf %11 : vector<256x128xf32> to vector<256x128xbf16>
    %c0_6 = arith.constant 0 : index
    %c0_7 = arith.constant 0 : index
    %13 = vector.load %arg4[%c0_6, %c0_7] : memref<128x256xbf16, #tpu.memory_space<vmem>>, vector<128x256xbf16>
    %cst_8 = arith.constant dense<0.000000e+00> : vector<256x256xf32>
    %14 = tpu.matmul %12, %13, %cst_8 {dimension_numbers = #tpu.dot_dimension_numbers<[1], [0], [0], [1], [0, 0, 1, 1], [], []>} : vector<256x128xbf16>, vector<128x256xbf16>, vector<256x256xf32> -> vector<256x256xf32>
    %c0_9 = arith.constant 0 : index
    %c0_10 = arith.constant 0 : index
    %15 = vector.load %arg5[%c0_9, %c0_10] : memref<1x256xf32, #tpu.memory_space<vmem>>, vector<1x256xf32>
    %16 = vector.broadcast %15 : vector<1x256xf32> to vector<256x256xf32>
    %17 = arith.addf %14, %16 : vector<256x256xf32>
    %c0_11 = arith.constant 0 : index
    %c0_12 = arith.constant 0 : index
    %18 = vector.load %arg6[%c0_11, %c0_12] : memref<256x256xf32, #tpu.memory_space<vmem>>, vector<256x256xf32>
    tpu.vector_store %arg6[%c0_11, %c0_12], %17 {strides = array<i32>} : memref<256x256xf32, #tpu.memory_space<vmem>>, vector<256x256xf32>,
    return
  }
  func.func @transform_0(%arg0: i32) -> (i32, i32) {
    %c0_i32 = arith.constant 0 : i32
    %c0_i32_0 = arith.constant 0 : i32
    return %arg0, %c0_i32 : i32, i32
  }
  func.func @transform_1(%arg0: i32) -> (i32, i32) {
    %c0_i32 = arith.constant 0 : i32
    %c0_i32_0 = arith.constant 0 : i32
    %c0_i32_1 = arith.constant 0 : i32
    return %c0_i32, %c0_i32_0 : i32, i32
  }
  func.func @transform_2(%arg0: i32) -> (i32, i32) {
    %c0_i32 = arith.constant 0 : i32
    %c0_i32_0 = arith.constant 0 : i32
    %c0_i32_1 = arith.constant 0 : i32
    return %c0_i32, %c0_i32_0 : i32, i32
  }
  func.func @transform_3(%arg0: i32) -> (i32, i32) {
    %c0_i32 = arith.constant 0 : i32
    %c0_i32_0 = arith.constant 0 : i32
    %c0_i32_1 = arith.constant 0 : i32
    return %c0_i32, %c0_i32_0 : i32, i32
  }
  func.func @transform_4(%arg0: i32) -> (i32, i32) {
    %c0_i32 = arith.constant 0 : i32
    %c0_i32_0 = arith.constant 0 : i32
    %c0_i32_1 = arith.constant 0 : i32
    return %c0_i32, %c0_i32_0 : i32, i32
  }
  func.func @transform_5(%arg0: i32) -> (i32, i32) {
    %c0_i32 = arith.constant 0 : i32
    %c0_i32_0 = arith.constant 0 : i32
    return %arg0, %c0_i32 : i32, i32
  }
}

</mosaic_0001>

<bundles_post_ra>
// kernel: autoencoder_forward.1
= control target key start
LH: loop header
LB: loop body
LE: loop exit
PB: predicated region body
PF: predicated region fallthrough
CT: control target
= control target key end

     0   :  { %10 = vsyncpa [#allocation3], 0  ;;  %s2486_s0 = inlined_call_operand.hbm [shape: f32[500,256], index: 0, kind: input, shape index: {}]   ;;  %s2487_s1 = inlined_call_operand.hbm [shape: bf16[256,128], index: 1, kind: input, shape index: {}]   ;;  %s2488_s2 = inlined_call_operand.vmem [shape: f32[1,128], index: 2, kind: input, shape index: {}]   ;;  %s2489_s3 = inlined_call_operand.hbm [shape: bf16[128,256], index: 3, kind: input, shape index: {}]   ;;  %s2490_s4 = inlined_call_operand.vmem [shape: f32[1,256], index: 4, kind: input, shape index: {}]   ;;  %s2491_s5 = inlined_call_operand.hbm [shape: f32[500,256], index: 5, kind: output, shape index: {}]  }
   0x1   :  { %12 = vsyncpa [#allocation3 + $0x1], 0 }
   0x2   :  { %13 = vsyncpa [#allocation6], 0 }
   0x3   :  { %14 = vsyncpa [#allocation4], 0 }
   0x4   :  { %16 = vsyncpa [#allocation4 + $0x1], 0  ;;  %s2013_s18 = smov 0   ;;  %s2015_s19 = smov 0  }
   0x5   :  { %s2017_s20 = smov 0   ;;  %s2019_s21 = smov 0  }
   0x6 LB: > { %s2034_s22 = sadd.s32 4294967295, %s1968_s21   ;;  %s1372_s23 = sadd.s32 4294967294, %s1968_s21   ;;  %s1968_s21 = sphi %s2019_s21, %s2508_s21   ;;  %s1964_s20 = sphi %s2017_s20, %s2507_s20   ;;  %s1960_s19 = sphi %s2015_s19, %s2506_s19   ;;  %s1956_s18 = sphi %s2013_s18, %s2505_s18  }
   0x7   : > { %s2038_s24 = sadd.s32 1, %s1968_s21   ;;  %s29_s25 = sadd.s32 1, %s1964_s20 }
   0x8   : > { %s26_s26 = ssub.s32 %s1968_s21, %s2038_s24  ;;  %p36_p0 = scmp.ne.s32.totalorder %s1964_s20, %s1960_s19 }
   0x9   : > { %p27_p1 = scmp.eq.s32.totalorder %s26_s26, 0  ;;  %p37_p2 = scmp.eq.s32.totalorder %s1968_s21, 0 }
   0xa   : > { %p42_p3 = scmp.ne.s32.totalorder %s1960_s19, %s1956_s18  ;;  %p2492_p4 = scmp.eq.s32.totalorder %s2034_s22, 0 }
   0xb   : > { %s2050_s27 = scalar_select %p27_p1, %s1964_s20, %s29_s25  }
   0xc   : > { %p2052_p5 = por %p37_p2, %p36_p0  ;;  %p2058_p6 = por %p2492_p4, %p42_p3 }
   0xd   : > { %p150_p7 = scmp.eq.s32.totalorder %s2034_s22, 1  ;;  %p156_p8 = scmp.eq.s32.totalorder %s1372_s23, 1 }
   0xe   : > { %s2495_s29 = scalar_select %p2058_p6, 1, 0 }
   0xf   : > { %p1373_p9 = scmp.ge.s32.totalorder %s1968_s21, 1  ;;  %p163_p10 = scmp.lt.s32.totalorder %s1968_s21, 3 }
  0x10   : > { %p2065_p11 = por %p150_p7, %p36_p0  ;;  %p2069_p12 = por %p156_p8, %p42_p3 }
  0x11   : > { %p2073_p13 = pnand %p1373_p9, %p163_p10  ;;  %s1970_s8 = smov [#allocation5]  }
  0x12   : > { %s2496_s30 = scalar_select %p2065_p11, 1, 0 }
  0x13   : > { %s2497_s6 = scalar_select %p2069_p12, 1, 0 }
  0x14   : > { %p1595_p1 = pneg %p2073_p13  ;;  %s175_s9 = sshll.u32 %s1970_s8, 4  ;;  %s176_s9 = int_to_ptr.vmem [resolvable:$true] %s175_s9 }
  0x15   : > { %s1971_s11 = smov [#allocation7]   ;;  %s1833_s13 = scalar_lea.vmem %s176_s9, 2048 }
  0x16   : > { %p2081_p2 = pnand %p1595_p1, %p2492_p4  ;;  %s191_s12 = sshll.u32 %s1971_s11, 4  ;;  %s192_s12 = int_to_ptr.vmem [resolvable:$true] %s191_s12 }
  0x17   : > { %p1834_p3 = scmp.ne.s32.totalorder %s176_s9, %s1833_s13  ;;  %p1841_p9 = scmp.lt.s32.totalorder %s176_s9, %s176_s9 }
  0x18   : > { %p1824_p0 = pneg %p2081_p2  ;;  %p1842_p10 = scmp.lt.s32.totalorder %s1833_s13, %s1833_s13 }
  0x1a   : > { %p1836_p7 = pnand %p1834_p3, %p1824_p0  ;;  %p1843_p12 = por %p1842_p10, %p1841_p9 }
  0x1c   : > { %p1837_p8 = pneg %p1836_p7 }
  0x1e   : > { %p1844_p1 = pnand %p1843_p12, %p1837_p8 }
  0x20   : > { %1847 = shalt.err (!%p1844_p1)
}
  0x21   : > { %s1972_s14 = smov 64   ;;  %s1973_s15 = smov 4  }
  0x22   : > { %1598 = dma.hbm_to_vmem [thread:$0]  (!%p2081_p2), %s2487_s1, 2048, %s176_s9, [#allocation6], %s1972_s14, %s1972_s14, %s1973_s15  }
  0x23   : > { %s1859_s23 = scalar_lea.vmem %s192_s12, 2048  ;;  %p1867_p11 = scmp.lt.s32.totalorder %s192_s12, %s192_s12 }
  0x24   : > { %p1860_p4 = scmp.ne.s32.totalorder %s192_s12, %s1859_s23  ;;  %p1868_p6 = scmp.lt.s32.totalorder %s1859_s23, %s1859_s23 }
  0x26   : > { %p1862_p3 = pnand %p1860_p4, %p1824_p0  ;;  %p1869_p9 = por %p1868_p6, %p1867_p11 }
  0x28   : > { %p1863_p7 = pneg %p1862_p3 }
  0x2a   : > { %p1870_p12 = pnand %p1869_p9, %p1863_p7 }
  0x2c   : > { %1873 = shalt.err (!%p1870_p12)
}
  0x2d   : > { %s1974_s25 = smov 128   ;;  %s1975_s26 = smov 8  }
  0x2e   : > { %1601 = dma.hbm_to_vmem [thread:$0]  (!%p2081_p2), %s2489_s3, 2048, %s192_s12, [#allocation6], %s1974_s25, %s1974_s25, %s1975_s26  }
  0x2f   : > { %p1376_p8 = scmp.ge.s32.totalorder %s1968_s21, 2 }
  0x31   : > { %204 = sbr.rel (%p1376_p8) target bundleno = 86 (0x56), region = 32 }
  0x36   : > { %207 = sbr.rel (!%p2052_p5) target bundleno = 86 (0x56), region = 36  ;;  %s208_s9 = sand.u32 (%p2052_p5), 1, %s1964_s20  }
  0x37   : > { %s1378_s13 = sshll.u32 (%p2052_p5), %s1968_s21, 5  ;;  %s1377_s14 = sshll.u32 (%p2052_p5), %s208_s9, 9 }
  0x38   : > { %s214_s15 = ssub.s32 (%p2052_p5), 63, %s1378_s13  ;;  %s2113_s16 = scalar_lea.sflag (%p2052_p5), [#allocation3], %s208_s9 }
  0x39   : > { %p215_p4 = scmp.lt.s32.totalorder (%p2052_p5), %s214_s15, 32  ;;  %s212_s17 = scalar_lea.vmem (%p2052_p5), [#allocation2], %s1377_s14 }
  0x3b   : > { %s2510_s15 = smov (!%p215_p4, %s214_s15), 32 }
  0x3c   : > { %s2110_s10 = sshll.u32 %s2510_s15, 8 }
  0x3d   : > { %s220_s12 = ssub.s32 8192, %s2110_s10 }
  0x3e   : > { %221 = vsyncadd %s2113_s16, %s220_s12  ;;  %p1381_p5 = scmp.ne.s32.totalorder %s2110_s10, 0  ;;  %s1469_s28 = sshll.u32 %s1968_s21, 13 }
  0x3f   : > { %s2121_s26 = scalar_lea.hbm %s2486_s0, %s1469_s28  ;;  %s227_s8 = sshll.u32 %s212_s17, 4  ;;  %s2123_s8 = int_to_ptr.vmem [resolvable:$true] %s227_s8 }
  0x40   : > { %s1874_s11 = scalar_lea.hbm %s2121_s26, %s2110_s10  ;;  %s1878_s14 = scalar_lea.hbm %s2486_s0, 16128 }
  0x41   : > { %p1875_p6 = scmp.ne.s32.totalorder %s2121_s26, %s1874_s11  ;;  %p1879_p0 = scmp.lt.s32.totalorder %s2121_s26, %s2486_s0 }
  0x42   : > { %p1880_p10 = scmp.lt.s32.totalorder %s1878_s14, %s1874_s11 }
  0x43   : > { %p1876_p11 = pnand %p1875_p6, %p1381_p5 }
  0x44   : > { %p1881_p1 = por %p1880_p10, %p1879_p0 }
  0x45   : > { %p1877_p2 = pneg %p1876_p11 }
  0x47   : > { %p1882_p3 = pnand %p1881_p1, %p1877_p2 }
  0x49   : > { %1885 = shalt.err (!%p1882_p3)
}
  0x4a   : > { %s1886_s17 = scalar_lea.vmem %s2123_s8, %s2110_s10  ;;  %s1976_s28 = smov [#allocation2]  }
  0x4b   : > { %p1887_p7 = scmp.ne.s32.totalorder %s2123_s8, %s1886_s17  ;;  %s1890_s23 = sshll.u32 %s1976_s28, 4  ;;  %s1891_s23 = int_to_ptr.vmem [resolvable:$false] %s1890_s23 }
  0x4c   : > { %s1892_s25 = scalar_lea.vmem %s1891_s23, 16384  ;;  %p1893_p4 = scmp.lt.s32.totalorder %s2123_s8, %s1891_s23 }
  0x4d   : > { %p1888_p9 = pnand %p1887_p7, %p1381_p5  ;;  %p1894_p6 = scmp.lt.s32.totalorder %s1892_s25, %s1886_s17 }
  0x4f   : > { %p1889_p12 = pneg %p1888_p9  ;;  %p1895_p11 = por %p1894_p6, %p1893_p4 }
  0x51   : > { %p1896_p0 = pnand %p1895_p11, %p1889_p12 }
  0x53   : > { %1899 = shalt.err (!%p1896_p0)
}
  0x54   : > { %s1977_s11 = smov 256   ;;  %s1978_s9 = smov 16  }
  0x55   : > { %233 = dma.hbm_to_vmem [thread:$0]  (%p1381_p5), %s2121_s26, %s2110_s10, %s2123_s8, %s2113_s16, %s1977_s11, %s1977_s11, %s1978_s9  }
  0x56 PF: > { %239 = sbr.rel (%p2073_p13) target bundleno = 715 (0x2cb), region = 40  ;;  %s2152_s13 = sand.u32 (!%p2073_p13), 1, %s1960_s19  }
  0x57   : > { %s1387_s14 = sshll.u32 (!%p2073_p13), %s2152_s13, 9  ;;  %s242_s15 = scalar_lea.sflag (!%p2073_p13), [#allocation3], %s2152_s13 }
  0x58   : > { %s2158_s12 = scalar_lea.vmem (!%p2073_p13), [#allocation2], %s1387_s14  ;;  %p2500_p2 = scmp.ne.s32.totalorder (!%p2073_p13), %s2495_s29, 0 }
  0x5b   : > { %1943 = dma.done.wait (%p2500_p2), %s242_s15, 8192  }
  0x5c   : > { %1945 = vsyncadd (%p2500_p2), %s242_s15, 4294959104  ;;  %p2501_p5 = scmp.eq.s32.totalorder %s2034_s22, 0 }
  0x5e   : > { %1947 = dma.done.wait (%p2501_p5), [#allocation6], 4096   ;;  %p2502_p13 = pmov %p2501_p5 }
  0x5f   : > { %v1654_v0 = vld [vmem:[#allocation5 + $0x78] sm:$0xff]   ;;  %v1656_v2 = vld [vmem:[#allocation5 + $0x70] sm:$0xff]   ;;  %v1658_v4 = vld [vmem:[#allocation5 + $0x68] sm:$0xff]   ;;  %s2295_s26 = scalar_lea.vmem [#allocation8], %s1387_s14  ;;  %s1259_s8 = scalar_lea.sflag [#allocation4], %s2152_s13 }
  0x60   : > { %1949 = vsyncadd (%p2502_p13), [#allocation6], 4294963200  ;;  %v1655_v1 = vld [vmem:[#allocation5 + $0x38] sm:$0xff]   ;;  %1473 = vmatprep.subr.bf16.mxu0 %v1654_v0  ;;  %v1657_v3 = vld [vmem:[#allocation5 + $0x30] sm:$0xff]   ;;  %p2503_p10 = scmp.ne.s32.totalorder %s2496_s30, 0 }
  0x61   : > { %1474 = vmatpush3.bf16.msra.mxu0 %v1655_v1  ;;  %v1659_v5 = vld [vmem:[#allocation5 + $0x28] sm:$0xff]   ;;  %v1660_v6 = vld [vmem:[#allocation5 + $0x60] sm:$0xff]   ;;  %v1662_v8 = vld [vmem:[#allocation5 + $0x58] sm:$0xff]   ;;  %s1457_s17 = sshll.u32 (%p2503_p10), %s2034_s22, 5 }
  0x62   : > { %1475 = vmatprep.subr.bf16.mxu0 %v1656_v2  ;;  %v1661_v7 = vld [vmem:[#allocation5 + $0x20] sm:$0xff]   ;;  %v1663_v9 = vld [vmem:[#allocation5 + $0x18] sm:$0xff]   ;;  %v1664_v10 = vld [vmem:[#allocation5 + $0x50] sm:$0xff]   ;;  %s1267_s28 = ssub.s32 (%p2503_p10), 63, %s1457_s17 }
  0x63   : > { %v294_v11 = vld [vmem:[%s2158_s12 + $0x8] sm:$0xff]  ;;  %v296_v12 = vld [vmem:[%s2158_s12 + $0x18] sm:$0xff]  ;;  %v1665_v14 = vld [vmem:[#allocation5 + $0x10] sm:$0xff]   ;;  %p1268_p1 = scmp.lt.s32.totalorder (%p2503_p10), %s1267_s28, 32 }
  0x64   : > { %v358_v13 = vpack.c.bf16 %v296_v12, %v294_v11  ;;  %v1666_v15 = vld [vmem:[#allocation5 + $0x48] sm:$0xff]   ;;  %v1668_v17 = vld [vmem:[#allocation5 + $0x40] sm:$0xff]   ;;  %v295_v20 = vld [vmem:[%s2158_s12 + $0x10] sm:$0xff] }
  0x65   : > { %1476 = vmatpush3.bf16.msra.mxu0 %v1657_v3  ;;  %v1667_v16 = vld [vmem:[#allocation5 + $0x8] sm:$0xff]   ;;  %v1669_v18 = vld [vmem:[#allocation5] sm:$0xff]   ;;  %v300_v22 = vld [vmem:[%s2158_s12 + $0x38] sm:$0xff] }
  0x66   : > { %1477 = vmatprep.subr.bf16.mxu0 %v1658_v4  ;;  %556 = vmatprep.mubr.bf16.mxu0 %v358_v13  ;;  %v293_v19 = vld [vmem:[%s2158_s12] sm:$0xff]  ;;  %v298_v21 = vld [vmem:[%s2158_s12 + $0x28] sm:$0xff]  ;;  %v299_v26 = vld [vmem:[%s2158_s12 + $0x30] sm:$0xff] }
  0x67   : > { %v357_v23 = vpack.c.bf16 %v295_v20, %v293_v19  ;;  %v360_v24 = vpack.c.bf16 %v300_v22, %v298_v21  ;;  %v297_v25 = vld [vmem:[%s2158_s12 + $0x20] sm:$0xff]  ;;  %v302_v27 = vld [vmem:[%s2158_s12 + $0x48] sm:$0xff]  ;;  %v304_v28 = vld [vmem:[%s2158_s12 + $0x58] sm:$0xff] }
  0x68   : > { %v359_v29 = vpack.c.bf16 %v299_v26, %v297_v25  ;;  %v362_v30 = vpack.c.bf16 %v304_v28, %v302_v27  ;;  %v301_v31 = vld [vmem:[%s2158_s12 + $0x40] sm:$0xff]  ;;  %v303_v32 = vld [vmem:[%s2158_s12 + $0x50] sm:$0xff]  ;;  %v306_v33 = vld [vmem:[%s2158_s12 + $0x68] sm:$0xff] }
  0x69   : > { %1478 = vmatpush3.bf16.msra.mxu0 %v1659_v5  ;;  %v308_v34 = vld [vmem:[%s2158_s12 + $0x78] sm:$0xff]  ;;  %v361_v35 = vpack.c.bf16 %v303_v32, %v301_v31  ;;  %v305_v37 = vld [vmem:[%s2158_s12 + $0x60] sm:$0xff]  ;;  %v307_v38 = vld [vmem:[%s2158_s12 + $0x70] sm:$0xff] }
  0x6a   : > { %1479 = vmatprep.subr.bf16.mxu0 %v1660_v6  ;;  %v364_v36 = vpack.c.bf16 %v308_v34, %v306_v33  ;;  %v310_v39 = vld [vmem:[%s2158_s12 + $0x88] sm:$0xff]  ;;  %v312_v40 = vld [vmem:[%s2158_s12 + $0x98] sm:$0xff]  ;;  %v363_v41 = vpack.c.bf16 %v307_v38, %v305_v37  ;;  %v309_v43 = vld [vmem:[%s2158_s12 + $0x80] sm:$0xff] }
  0x6b   : > { %v366_v42 = vpack.c.bf16 %v312_v40, %v310_v39  ;;  %v311_v44 = vld [vmem:[%s2158_s12 + $0x90] sm:$0xff]  ;;  %v314_v45 = vld [vmem:[%s2158_s12 + $0xa8] sm:$0xff]  ;;  %v316_v46 = vld [vmem:[%s2158_s12 + $0xb8] sm:$0xff] }
  0x6c   : > { %v365_v47 = vpack.c.bf16 %v311_v44, %v309_v43  ;;  %v368_v48 = vpack.c.bf16 %v316_v46, %v314_v45  ;;  %v313_v49 = vld [vmem:[%s2158_s12 + $0xa0] sm:$0xff]  ;;  %v315_v50 = vld [vmem:[%s2158_s12 + $0xb0] sm:$0xff]  ;;  %v318_v51 = vld [vmem:[%s2158_s12 + $0xc8] sm:$0xff] }
  0x6d   : > { %1480 = vmatpush3.bf16.msra.mxu0 %v1661_v7  ;;  %v320_v52 = vld [vmem:[%s2158_s12 + $0xd8] sm:$0xff]  ;;  %v367_v53 = vpack.c.bf16 %v315_v50, %v313_v49  ;;  %v317_v55 = vld [vmem:[%s2158_s12 + $0xc0] sm:$0xff]  ;;  %v319_v56 = vld [vmem:[%s2158_s12 + $0xd0] sm:$0xff] }
  0x6e   : > { %1481 = vmatprep.subr.bf16.mxu0 %v1662_v8  ;;  %v370_v54 = vpack.c.bf16 %v320_v52, %v318_v51  ;;  %v322_v57 = vld [vmem:[%s2158_s12 + $0xe8] sm:$0xff]  ;;  %v324_v58 = vld [vmem:[%s2158_s12 + $0xf8] sm:$0xff]  ;;  %v369_v59 = vpack.c.bf16 %v319_v56, %v317_v55  ;;  %v321_v61 = vld [vmem:[%s2158_s12 + $0xe0] sm:$0xff] }
  0x6f   : > { %v372_v60 = vpack.c.bf16 %v324_v58, %v322_v57  ;;  %v323_v62 = vld [vmem:[%s2158_s12 + $0xf0] sm:$0xff]  ;;  %v326_v63 = vld [vmem:[%s2158_s12 + $0x108] sm:$0xff]  ;;  %v328_v0 = vld [vmem:[%s2158_s12 + $0x118] sm:$0xff] }
  0x70   : > { %v371_v1 = vpack.c.bf16 %v323_v62, %v321_v61  ;;  %v374_v2 = vpack.c.bf16 %v328_v0, %v326_v63  ;;  %v325_v3 = vld [vmem:[%s2158_s12 + $0x100] sm:$0xff]  ;;  %v327_v4 = vld [vmem:[%s2158_s12 + $0x110] sm:$0xff]  ;;  %v330_v5 = vld [vmem:[%s2158_s12 + $0x128] sm:$0xff]  ;;  %v1979_v61 = vmov 0  }
  0x71   : > { %1482 = vmatpush3.bf16.msra.mxu0 %v1663_v9  ;;  %v332_v6 = vld [vmem:[%s2158_s12 + $0x138] sm:$0xff]  ;;  %v373_v7 = vpack.c.bf16 %v327_v4, %v325_v3  ;;  %v329_v9 = vld [vmem:[%s2158_s12 + $0x120] sm:$0xff]  ;;  %v334_v11 = vld [vmem:[%s2158_s12 + $0x148] sm:$0xff]  ;;  %1033 = vmatprep.mubr.bf16.mxu1 %v1979_v61 }
  0x72   : > { %1483 = vmatprep.subr.bf16.mxu0 %v1664_v10  ;;  %v376_v8 = vpack.c.bf16 %v332_v6, %v330_v5  ;;  %v331_v10 = vld [vmem:[%s2158_s12 + $0x130] sm:$0xff]  ;;  %v336_v12 = vld [vmem:[%s2158_s12 + $0x158] sm:$0xff]  ;;  %v1675_v26 = vld [vmem:[#allocation7 + $0x60] ss:$8 sps:$4 sm:$0xff]  }
  0x73   : > { %v375_v13 = vpack.c.bf16 %v331_v10, %v329_v9  ;;  %v1670_v19 = vld [vmem:[#allocation7 + $0x74] ss:$8 sps:$4 sm:$0xff]   ;;  %v1672_v21 = vld [vmem:[#allocation7 + $0x70] ss:$8 sps:$4 sm:$0xff]   ;;  %v342_v27 = vld [vmem:[%s2158_s12 + $0x188] sm:$0xff] }
  0x74   : > { %1001 = vmatprep.subr.bf16.mxu1 %v1670_v19  ;;  %v339_v25 = vld [vmem:[%s2158_s12 + $0x170] sm:$0xff]  ;;  %v344_v28 = vld [vmem:[%s2158_s12 + $0x198] sm:$0xff]  ;;  %v1679_v33 = vld [vmem:[#allocation7 + $0x44] ss:$8 sps:$4 sm:$0xff]  }
  0x75   : > { %1484 = vmatpush3.bf16.msra.mxu0 %v1665_v14  ;;  %v378_v14 = vpack.c.bf16 %v336_v12, %v334_v11  ;;  %1002 = vmatpush1.bf16.msra.mxu1 %v1672_v21  ;;  %v382_v31 = vpack.c.bf16 %v344_v28, %v342_v27  ;;  %v1678_v32 = vld [vmem:[#allocation7 + $0x50] ss:$8 sps:$4 sm:$0xff]   ;;  %v341_v34 = vld [vmem:[%s2158_s12 + $0x180] sm:$0xff]  ;;  %v346_v37 = vld [vmem:[%s2158_s12 + $0x1a8] sm:$0xff] }
  0x76   : > { %1485 = vmatprep.subr.bf16.mxu0 %v1666_v15  ;;  %v333_v15 = vld [vmem:[%s2158_s12 + $0x140] sm:$0xff]  ;;  %v348_v38 = vld [vmem:[%s2158_s12 + $0x1b8] sm:$0xff]  ;;  %v347_v45 = vld [vmem:[%s2158_s12 + $0x1b0] sm:$0xff] }
  0x77   : > { %v1682_v40 = vld [vmem:[#allocation7 + $0x34] ss:$8 sps:$4 sm:$0xff]   ;;  %v1685_v43 = vld [vmem:[#allocation7 + $0x24] ss:$8 sps:$4 sm:$0xff]   ;;  %v1687_v46 = vld [vmem:[#allocation7 + $0x20] ss:$8 sps:$4 sm:$0xff]  }
  0x78   : > { %v345_v44 = vld [vmem:[%s2158_s12 + $0x1a0] sm:$0xff]  ;;  %v1688_v50 = vld [vmem:[#allocation7 + $0x14] ss:$8 sps:$4 sm:$0xff]   ;;  %v1690_v52 = vld [vmem:[#allocation7 + $0x10] ss:$8 sps:$4 sm:$0xff]  }
  0x79   : > { %1486 = vmatpush3.bf16.msra.mxu0 %v1667_v16  ;;  %v335_v16 = vld [vmem:[%s2158_s12 + $0x150] sm:$0xff]  ;;  %v383_v49 = vpack.c.bf16 %v347_v45, %v345_v44  ;;  %v1693_v56 = vld [vmem:[#allocation7] ss:$8 sps:$4 sm:$0xff]   ;;  %v356_v58 = vld [vmem:[%s2158_s12 + $0x1f8] sm:$0xff] }
  0x7a   : > { %1487 = vmatprep.subr.bf16.mxu0 %v1668_v17  ;;  %v338_v17 = vld [vmem:[%s2158_s12 + $0x168] sm:$0xff]  ;;  %v377_v20 = vpack.c.bf16 %v335_v16, %v333_v15  ;;  %v351_v55 = vld [vmem:[%s2158_s12 + $0x1d0] sm:$0xff]  ;;  %v353_v62 = vld [vmem:[%s2158_s12 + $0x1e0] sm:$0xff] }
  0x7b   : > { %v354_v57 = vld [vmem:[%s2158_s12 + $0x1e8] sm:$0xff]  ;;  %v355_v63 = vld [vmem:[%s2158_s12 + $0x1f0] sm:$0xff] }
  0x7c   : > { %v387_v0 = vpack.c.bf16 %v355_v63, %v353_v62 }
  0x7d   : > { %1488 = vmatpush3.bf16.msra.mxu0 %v1669_v18  ;;  %v340_v18 = vld [vmem:[%s2158_s12 + $0x178] sm:$0xff] }
  0x7e   : > { %v380_v22 = vpack.c.bf16 %v340_v18, %v338_v17 }
  0x80   : > { %557 = vmatmul.mubr.bf16.vlgmr.msra.gmra.mxu0 %v357_v23  ;;  %v1673_v23 = vld [vmem:[#allocation7 + $0x64] ss:$8 sps:$4 sm:$0xff]  }
  0x81   : > { %564 = vmatprep.mubr.bf16.mxu0 %v360_v24  ;;  %v337_v24 = vld [vmem:[%s2158_s12 + $0x160] sm:$0xff]  ;;  %1003 = vmatprep.subr.bf16.mxu1 %v1673_v23 }
  0x82   : > { %1004 = vmatpush1.bf16.msra.mxu1 %v1675_v26 }
  0x88   : > { %565 = vmatmul.mubr.bf16.gmra.mxu0 %v359_v29  ;;  %v379_v29 = vpack.c.bf16 %v339_v25, %v337_v24 }
  0x89   : > { %572 = vmatprep.mubr.bf16.mxu0 %v362_v30  ;;  %v1676_v30 = vld [vmem:[#allocation7 + $0x54] ss:$8 sps:$4 sm:$0xff]  }
  0x8a   : > { %1005 = vmatprep.subr.bf16.mxu1 %v1676_v30 }
  0x8b   : > { %1006 = vmatpush1.bf16.msra.mxu1 %v1678_v32 }
  0x8c   : > { %1007 = vmatprep.subr.bf16.mxu1 %v1679_v33 }
  0x90   : > { %573 = vmatmul.mubr.bf16.gmra.mxu0 %v361_v35  ;;  %v343_v35 = vld [vmem:[%s2158_s12 + $0x190] sm:$0xff] }
  0x91   : > { %580 = vmatprep.mubr.bf16.mxu0 %v364_v36  ;;  %v1681_v36 = vld [vmem:[#allocation7 + $0x40] ss:$8 sps:$4 sm:$0xff]   ;;  %v381_v39 = vpack.c.bf16 %v343_v35, %v341_v34 }
  0x92   : > { %1008 = vmatpush1.bf16.msra.mxu1 %v1681_v36 }
  0x93   : > { %1009 = vmatprep.subr.bf16.mxu1 %v1682_v40 }
  0x98   : > { %581 = vmatmul.mubr.bf16.gmra.mxu0 %v363_v41  ;;  %v384_v41 = vpack.c.bf16 %v348_v38, %v346_v37 }
  0x99   : > { %588 = vmatprep.mubr.bf16.mxu0 %v366_v42  ;;  %v1684_v42 = vld [vmem:[#allocation7 + $0x30] ss:$8 sps:$4 sm:$0xff]  }
  0x9a   : > { %1010 = vmatpush1.bf16.msra.mxu1 %v1684_v42 }
  0x9b   : > { %1011 = vmatprep.subr.bf16.mxu1 %v1685_v43 }
  0x9e   : > { %1012 = vmatpush1.bf16.msra.mxu1 %v1687_v46 }
  0x9f   : > { %1013 = vmatprep.subr.bf16.mxu1 %v1688_v50 }
  0xa0   : > { %589 = vmatmul.mubr.bf16.gmra.mxu0 %v365_v47  ;;  %v350_v47 = vld [vmem:[%s2158_s12 + $0x1c8] sm:$0xff] }
  0xa1   : > { %596 = vmatprep.mubr.bf16.mxu0 %v368_v48  ;;  %v352_v48 = vld [vmem:[%s2158_s12 + $0x1d8] sm:$0xff] }
  0xa2   : > { %v386_v51 = vpack.c.bf16 %v352_v48, %v350_v47  ;;  %1014 = vmatpush1.bf16.msra.mxu1 %v1690_v52 }
  0xa8   : > { %597 = vmatmul.mubr.bf16.gmra.mxu0 %v367_v53  ;;  %v1691_v53 = vld [vmem:[#allocation7 + $0x4] ss:$8 sps:$4 sm:$0xff]  }
  0xa9   : > { %604 = vmatprep.mubr.bf16.mxu0 %v370_v54  ;;  %v349_v54 = vld [vmem:[%s2158_s12 + $0x1c0] sm:$0xff]  ;;  %1015 = vmatprep.subr.bf16.mxu1 %v1691_v53 }
  0xaa   : > { %1016 = vmatpush1.bf16.msra.mxu1 %v1693_v56 }
  0xb0   : > { %605 = vmatmul.mubr.bf16.gmra.mxu0 %v369_v59  ;;  %v385_v59 = vpack.c.bf16 %v351_v55, %v349_v54 }
  0xb1   : > { %612 = vmatprep.mubr.bf16.mxu0 %v372_v60  ;;  %v388_v60 = vpack.c.bf16 %v356_v58, %v354_v57 }
  0xb8   : > { %613 = vmatmul.mubr.bf16.gmra.mxu0 %v371_v1 }
  0xb9   : > { %620 = vmatprep.mubr.bf16.mxu0 %v374_v2  ;;  %v2236_v2 = vld [vmem:[%s2488_s2] ss:$0 sm:$0xff] }
  0xc0   : > { %621 = vmatmul.mubr.bf16.gmra.mxu0 %v373_v7 }
  0xc1   : > { %628 = vmatprep.mubr.bf16.mxu0 %v376_v8 }
  0xc8   : > { %629 = vmatmul.mubr.bf16.gmra.mxu0 %v375_v13 }
  0xc9   : > { %636 = vmatprep.mubr.bf16.mxu0 %v378_v14 }
  0xd0   : > { %637 = vmatmul.mubr.bf16.gmra.mxu0 %v377_v20 }
  0xd1   : > { %644 = vmatprep.mubr.bf16.mxu0 %v380_v22 }
  0xd8   : > { %645 = vmatmul.mubr.bf16.gmra.mxu0 %v379_v29 }
  0xd9   : > { %652 = vmatprep.mubr.bf16.mxu0 %v382_v31 }
  0xe0   : > { %653 = vmatmul.mubr.bf16.gmra.mxu0 %v381_v39 }
  0xe1   : > { %660 = vmatprep.mubr.bf16.mxu0 %v384_v41 }
  0xe8   : > { %661 = vmatmul.mubr.bf16.gmra.mxu0 %v383_v49 }
  0xe9   : > { %668 = vmatprep.mubr.bf16.mxu0 %v386_v51 }
  0xf0   : > { %669 = vmatmul.mubr.bf16.gmra.mxu0 %v385_v59 }
  0xf1   : > { %676 = vmatprep.mubr.bf16.mxu0 %v388_v60 }
  0xf8   : > { %677 = vmatmul.mubr.bf16.gmra.mxu0 %v387_v0 }
 0x140   : > { %v1489_v1 = vpop.f32.mrf.mxu0 }
 0x142   : > { %v1490_v3 = vpop.f32.mrf.mxu0 }
 0x143   : > { %v1491_v4 = vadd.f32 %v1490_v3, %v1489_v1 }
 0x144   : > { %v1492_v5 = vpop.f32.mrf.mxu0 }
 0x145   : > { %v559_v6 = vadd.f32 %v1491_v4, %v2236_v2 }
 0x146   : > { %v1493_v7 = vpop.f32.mrf.mxu0 }
 0x147   : > { %v1408_v8 = vmul.f32 -1.442695, %v559_v6  ;;  %v1494_v9 = vadd.f32 %v1493_v7, %v1492_v5 }
 0x148   : > { %v1495_v10 = vpop.f32.mrf.mxu0 }
 0x149   : > { %1694 = vpow2.f32 %v1408_v8  ;;  %v562_v11 = vadd.f32 %v1494_v9, %v2236_v2 }
 0x14a   : > { %v1496_v12 = vpop.f32.mrf.mxu0 }
 0x14b   : > { %v1409_v13 = vmul.f32 -1.442695, %v562_v11  ;;  %v1497_v14 = vadd.f32 %v1496_v12, %v1495_v10 }
 0x14c   : > { %v1498_v15 = vpop.f32.mrf.mxu0 }
 0x14d   : > { %1696 = vpow2.f32 %v1409_v13  ;;  %v567_v16 = vadd.f32 %v1497_v14, %v2236_v2 }
 0x14e   : > { %v1499_v17 = vpop.f32.mrf.mxu0 }
 0x14f   : > { %v1410_v18 = vmul.f32 -1.442695, %v567_v16  ;;  %v1500_v19 = vadd.f32 %v1499_v17, %v1498_v15 }
 0x150   : > { %v1501_v20 = vpop.f32.mrf.mxu0 }
 0x151   : > { %1698 = vpow2.f32 %v1410_v18  ;;  %v570_v21 = vadd.f32 %v1500_v19, %v2236_v2 }
 0x152   : > { %v1502_v22 = vpop.f32.mrf.mxu0 }
 0x153   : > { %v1411_v23 = vmul.f32 -1.442695, %v570_v21  ;;  %v1503_v24 = vadd.f32 %v1502_v22, %v1501_v20 }
 0x154   : > { %v1504_v25 = vpop.f32.mrf.mxu0 }
 0x155   : > { %1700 = vpow2.f32 %v1411_v23  ;;  %v575_v26 = vadd.f32 %v1503_v24, %v2236_v2 }
 0x156   : > { %v1695_v27 = vpop.eup %1694  ;;  %v1505_v28 = vpop.f32.mrf.mxu0 }
 0x157   : > { %v1412_v29 = vmul.f32 -1.442695, %v575_v26  ;;  %v1506_v30 = vadd.f32 %v1505_v28, %v1504_v25  ;;  %v781_v31 = vadd.f32 1.0, %v1695_v27 }
 0x158   : > { %v1507_v32 = vpop.f32.mrf.mxu0 }
 0x159   : > { %v578_v33 = vadd.f32 %v1506_v30, %v2236_v2  ;;  %1702 = vpow2.f32 %v1412_v29 }
 0x15a   : > { %v1697_v34 = vpop.eup %1696  ;;  %v1508_v35 = vpop.f32.mrf.mxu0  ;;  %1704 = vrcp.f32 %v781_v31 }
 0x15b   : > { %v782_v36 = vadd.f32 1.0, %v1697_v34  ;;  %v1413_v37 = vmul.f32 -1.442695, %v578_v33  ;;  %v1509_v38 = vadd.f32 %v1508_v35, %v1507_v32 }
 0x15c   : > { %v1510_v39 = vpop.f32.mrf.mxu0 }
 0x15d   : > { %1706 = vrcp.f32 %v782_v36  ;;  %v583_v40 = vadd.f32 %v1509_v38, %v2236_v2 }
 0x15e   : > { %v1699_v41 = vpop.eup %1698  ;;  %1708 = vpow2.f32 %v1413_v37  ;;  %v1511_v42 = vpop.f32.mrf.mxu0 }
 0x15f   : > { %v1414_v43 = vmul.f32 -1.442695, %v583_v40  ;;  %v1512_v44 = vadd.f32 %v1511_v42, %v1510_v39  ;;  %v783_v45 = vadd.f32 1.0, %v1699_v41 }
 0x160   : > { %v1513_v46 = vpop.f32.mrf.mxu0 }
 0x161   : > { %v586_v47 = vadd.f32 %v1512_v44, %v2236_v2  ;;  %1710 = vpow2.f32 %v1414_v43 }
 0x162   : > { %v1701_v48 = vpop.eup %1700  ;;  %v1514_v49 = vpop.f32.mrf.mxu0  ;;  %1712 = vrcp.f32 %v783_v45 }
 0x163   : > { %v784_v50 = vadd.f32 1.0, %v1701_v48  ;;  %v1415_v51 = vmul.f32 -1.442695, %v586_v47  ;;  %v1515_v52 = vadd.f32 %v1514_v49, %v1513_v46 }
 0x164   : > { %v1516_v53 = vpop.f32.mrf.mxu0 }
 0x165   : > { %1714 = vrcp.f32 %v784_v50  ;;  %v591_v54 = vadd.f32 %v1515_v52, %v2236_v2 }
 0x166   : > { %1716 = vpow2.f32 %v1415_v51  ;;  %v1517_v55 = vpop.f32.mrf.mxu0  ;;  %v1703_v56 = vpop.eup %1702 }
 0x167   : > { %v1416_v57 = vmul.f32 -1.442695, %v591_v54  ;;  %v1518_v58 = vadd.f32 %v1517_v55, %v1516_v53  ;;  %v785_v59 = vadd.f32 1.0, %v1703_v56  ;;  %v1705_v62 = vpop.eup %1704 }
 0x168   : > { %v1519_v60 = vpop.f32.mrf.mxu0 }
 0x169   : > { %1718 = vpow2.f32 %v1416_v57  ;;  %v594_v63 = vadd.f32 %v1518_v58, %v2236_v2 }
 0x16a   : > { %v1707_v0 = vpop.eup %1706  ;;  %v1520_v1 = vpop.f32.mrf.mxu0  ;;  %1720 = vrcp.f32 %v785_v59 }
 0x16b   : > { %v1709_v3 = vpop.eup %1708  ;;  %v1417_v4 = vmul.f32 -1.442695, %v594_v63  ;;  %v1521_v5 = vadd.f32 %v1520_v1, %v1519_v60  ;;  %v877_v6 = vpack.c.bf16 %v1707_v0, %v1705_v62 }
 0x16c   : > { %v786_v7 = vadd.f32 1.0, %v1709_v3  ;;  %v1522_v8 = vpop.f32.mrf.mxu0 }
 0x16d   : > { %1722 = vpow2.f32 %v1417_v4  ;;  %v599_v9 = vadd.f32 %v1521_v5, %v2236_v2  ;;  %1034 = vmatmul.mubr.bf16.vlgmr.msra.gmra.mxu1 %v877_v6 }
 0x16e   : > { %1724 = vrcp.f32 %v786_v7  ;;  %v1523_v10 = vpop.f32.mrf.mxu0  ;;  %1043 = vmatprep.mubr.bf16.mxu1 %v1979_v61  ;;  %v1711_v11 = vpop.eup %1710 }
 0x16f   : > { %v1418_v12 = vmul.f32 -1.442695, %v599_v9  ;;  %v1524_v13 = vadd.f32 %v1523_v10, %v1522_v8  ;;  %v787_v14 = vadd.f32 1.0, %v1711_v11  ;;  %v1713_v16 = vpop.eup %1712 }
 0x170   : > { %v1525_v15 = vpop.f32.mrf.mxu0 }
 0x171   : > { %1726 = vpow2.f32 %v1418_v12  ;;  %v602_v17 = vadd.f32 %v1524_v13, %v2236_v2 }
 0x172   : > { %v1715_v18 = vpop.eup %1714  ;;  %v1526_v19 = vpop.f32.mrf.mxu0  ;;  %1728 = vrcp.f32 %v787_v14 }
 0x173   : > { %v1717_v20 = vpop.eup %1716  ;;  %v1419_v21 = vmul.f32 -1.442695, %v602_v17  ;;  %v1527_v22 = vadd.f32 %v1526_v19, %v1525_v15  ;;  %v878_v23 = vpack.c.bf16 %v1715_v18, %v1713_v16 }
 0x174   : > { %v788_v24 = vadd.f32 1.0, %v1717_v20  ;;  %v1528_v25 = vpop.f32.mrf.mxu0 }
 0x175   : > { %1730 = vpow2.f32 %v1419_v21  ;;  %v607_v26 = vadd.f32 %v1527_v22, %v2236_v2  ;;  %1044 = vmatmul.mubr.bf16.gmra.mxu1 %v878_v23 }
 0x176   : > { %v1719_v27 = vpop.eup %1718  ;;  %1732 = vrcp.f32 %v788_v24  ;;  %v1529_v28 = vpop.f32.mrf.mxu0  ;;  %1053 = vmatprep.mubr.bf16.mxu1 %v1979_v61 }
 0x177   : > { %v1420_v29 = vmul.f32 -1.442695, %v607_v26  ;;  %v1530_v30 = vadd.f32 %v1529_v28, %v1528_v25  ;;  %v789_v31 = vadd.f32 1.0, %v1719_v27  ;;  %v1721_v33 = vpop.eup %1720 }
 0x178   : > { %v1531_v32 = vpop.f32.mrf.mxu0 }
 0x179   : > { %v610_v34 = vadd.f32 %v1530_v30, %v2236_v2  ;;  %1734 = vpow2.f32 %v1420_v29 }
 0x17a   : > { %v1723_v35 = vpop.eup %1722  ;;  %v1532_v36 = vpop.f32.mrf.mxu0  ;;  %1736 = vrcp.f32 %v789_v31 }
 0x17b   : > { %v1725_v37 = vpop.eup %1724  ;;  %v790_v38 = vadd.f32 1.0, %v1723_v35  ;;  %v1421_v39 = vmul.f32 -1.442695, %v610_v34  ;;  %v1533_v40 = vadd.f32 %v1532_v36, %v1531_v32 }
 0x17c   : > { %v1534_v41 = vpop.f32.mrf.mxu0  ;;  %v879_v42 = vpack.c.bf16 %v1725_v37, %v1721_v33 }
 0x17d   : > { %1738 = vrcp.f32 %v790_v38  ;;  %v615_v43 = vadd.f32 %v1533_v40, %v2236_v2 }
 0x17e   : > { %v1727_v44 = vpop.eup %1726  ;;  %1740 = vpow2.f32 %v1421_v39  ;;  %1054 = vmatmul.mubr.bf16.gmra.mxu1 %v879_v42  ;;  %v1535_v45 = vpop.f32.mrf.mxu0 }
 0x17f   : > { %v1422_v46 = vmul.f32 -1.442695, %v615_v43  ;;  %v1536_v47 = vadd.f32 %v1535_v45, %v1534_v41  ;;  %1063 = vmatprep.mubr.bf16.mxu1 %v1979_v61  ;;  %v791_v48 = vadd.f32 1.0, %v1727_v44  ;;  %v1729_v50 = vpop.eup %1728 }
 0x180   : > { %v1537_v49 = vpop.f32.mrf.mxu0 }
 0x181   : > { %v618_v51 = vadd.f32 %v1536_v47, %v2236_v2  ;;  %1742 = vpow2.f32 %v1422_v46 }
 0x182   : > { %v1731_v52 = vpop.eup %1730  ;;  %v1538_v53 = vpop.f32.mrf.mxu0  ;;  %1744 = vrcp.f32 %v791_v48 }
 0x183   : > { %v1733_v54 = vpop.eup %1732  ;;  %v792_v55 = vadd.f32 1.0, %v1731_v52  ;;  %v1423_v56 = vmul.f32 -1.442695, %v618_v51  ;;  %v1539_v57 = vadd.f32 %v1538_v53, %v1537_v49 }
 0x184   : > { %v1540_v58 = vpop.f32.mrf.mxu0  ;;  %v880_v59 = vpack.c.bf16 %v1733_v54, %v1729_v50 }
 0x185   : > { %1746 = vrcp.f32 %v792_v55  ;;  %v623_v60 = vadd.f32 %v1539_v57, %v2236_v2 }
 0x186   : > { %1748 = vpow2.f32 %v1423_v56  ;;  %1064 = vmatmul.mubr.bf16.gmra.mxu1 %v880_v59  ;;  %v1541_v62 = vpop.f32.mrf.mxu0  ;;  %v1735_v63 = vpop.eup %1734 }
 0x187   : > { %v1424_v0 = vmul.f32 -1.442695, %v623_v60  ;;  %v1542_v1 = vadd.f32 %v1541_v62, %v1540_v58  ;;  %1073 = vmatprep.mubr.bf16.mxu1 %v1979_v61  ;;  %v793_v3 = vadd.f32 1.0, %v1735_v63  ;;  %v1737_v5 = vpop.eup %1736 }
 0x188   : > { %v1543_v4 = vpop.f32.mrf.mxu0 }
 0x189   : > { %1750 = vpow2.f32 %v1424_v0  ;;  %v626_v6 = vadd.f32 %v1542_v1, %v2236_v2 }
 0x18a   : > { %v1739_v7 = vpop.eup %1738  ;;  %v1544_v8 = vpop.f32.mrf.mxu0  ;;  %1752 = vrcp.f32 %v793_v3 }
 0x18b   : > { %v1741_v9 = vpop.eup %1740  ;;  %v1425_v10 = vmul.f32 -1.442695, %v626_v6  ;;  %v1545_v11 = vadd.f32 %v1544_v8, %v1543_v4  ;;  %v881_v12 = vpack.c.bf16 %v1739_v7, %v1737_v5 }
 0x18c   : > { %v794_v13 = vadd.f32 1.0, %v1741_v9  ;;  %v1546_v14 = vpop.f32.mrf.mxu0 }
 0x18d   : > { %1754 = vpow2.f32 %v1425_v10  ;;  %v631_v15 = vadd.f32 %v1545_v11, %v2236_v2 }
 0x18e   : > { %1756 = vrcp.f32 %v794_v13  ;;  %1074 = vmatmul.mubr.bf16.gmra.mxu1 %v881_v12  ;;  %v1547_v16 = vpop.f32.mrf.mxu0  ;;  %v1743_v17 = vpop.eup %1742 }
 0x18f   : > { %v1426_v18 = vmul.f32 -1.442695, %v631_v15  ;;  %v1548_v19 = vadd.f32 %v1547_v16, %v1546_v14  ;;  %1083 = vmatprep.mubr.bf16.mxu1 %v1979_v61  ;;  %v795_v20 = vadd.f32 1.0, %v1743_v17  ;;  %v1745_v22 = vpop.eup %1744 }
 0x190   : > { %v1549_v21 = vpop.f32.mrf.mxu0 }
 0x191   : > { %1758 = vpow2.f32 %v1426_v18  ;;  %v634_v23 = vadd.f32 %v1548_v19, %v2236_v2 }
 0x192   : > { %v1747_v24 = vpop.eup %1746  ;;  %v1550_v25 = vpop.f32.mrf.mxu0  ;;  %1760 = vrcp.f32 %v795_v20 }
 0x193   : > { %v1749_v26 = vpop.eup %1748  ;;  %v1427_v27 = vmul.f32 -1.442695, %v634_v23  ;;  %v1551_v28 = vadd.f32 %v1550_v25, %v1549_v21  ;;  %v882_v29 = vpack.c.bf16 %v1747_v24, %v1745_v22 }
 0x194   : > { %v796_v30 = vadd.f32 1.0, %v1749_v26  ;;  %v1552_v31 = vpop.f32.mrf.mxu0 }
 0x195   : > { %1762 = vpow2.f32 %v1427_v27  ;;  %v639_v32 = vadd.f32 %v1551_v28, %v2236_v2 }
 0x196   : > { %v1751_v33 = vpop.eup %1750  ;;  %1764 = vrcp.f32 %v796_v30  ;;  %1084 = vmatmul.mubr.bf16.gmra.mxu1 %v882_v29  ;;  %v1553_v34 = vpop.f32.mrf.mxu0 }
 0x197   : > { %v1428_v35 = vmul.f32 -1.442695, %v639_v32  ;;  %v1554_v36 = vadd.f32 %v1553_v34, %v1552_v31  ;;  %1093 = vmatprep.mubr.bf16.mxu1 %v1979_v61  ;;  %v797_v37 = vadd.f32 1.0, %v1751_v33  ;;  %v1753_v39 = vpop.eup %1752 }
 0x198   : > { %v1555_v38 = vpop.f32.mrf.mxu0 }
 0x199   : > { %v642_v40 = vadd.f32 %v1554_v36, %v2236_v2  ;;  %1766 = vpow2.f32 %v1428_v35 }
 0x19a   : > { %v1755_v41 = vpop.eup %1754  ;;  %v1556_v42 = vpop.f32.mrf.mxu0  ;;  %1768 = vrcp.f32 %v797_v37 }
 0x19b   : > { %v1757_v43 = vpop.eup %1756  ;;  %v798_v44 = vadd.f32 1.0, %v1755_v41  ;;  %v1429_v45 = vmul.f32 -1.442695, %v642_v40  ;;  %v1557_v46 = vadd.f32 %v1556_v42, %v1555_v38 }
 0x19c   : > { %v1558_v47 = vpop.f32.mrf.mxu0  ;;  %v883_v48 = vpack.c.bf16 %v1757_v43, %v1753_v39 }
 0x19d   : > { %1770 = vrcp.f32 %v798_v44  ;;  %v647_v49 = vadd.f32 %v1557_v46, %v2236_v2 }
 0x19e   : > { %v1759_v50 = vpop.eup %1758  ;;  %1772 = vpow2.f32 %v1429_v45  ;;  %1094 = vmatmul.mubr.bf16.gmra.mxu1 %v883_v48  ;;  %v1559_v51 = vpop.f32.mrf.mxu0 }
 0x19f   : > { %v1430_v52 = vmul.f32 -1.442695, %v647_v49  ;;  %v1560_v53 = vadd.f32 %v1559_v51, %v1558_v47  ;;  %1103 = vmatprep.mubr.bf16.mxu1 %v1979_v61  ;;  %v799_v54 = vadd.f32 1.0, %v1759_v50  ;;  %v1761_v56 = vpop.eup %1760 }
 0x1a0   : > { %v1561_v55 = vpop.f32.mrf.mxu0 }
 0x1a1   : > { %v650_v57 = vadd.f32 %v1560_v53, %v2236_v2  ;;  %1774 = vpow2.f32 %v1430_v52 }
 0x1a2   : > { %v1763_v58 = vpop.eup %1762  ;;  %v1562_v59 = vpop.f32.mrf.mxu0  ;;  %1776 = vrcp.f32 %v799_v54 }
 0x1a3   : > { %v1765_v60 = vpop.eup %1764  ;;  %v800_v62 = vadd.f32 1.0, %v1763_v58  ;;  %v1431_v63 = vmul.f32 -1.442695, %v650_v57  ;;  %v1563_v0 = vadd.f32 %v1562_v59, %v1561_v55 }
 0x1a4   : > { %v1564_v1 = vpop.f32.mrf.mxu0  ;;  %v884_v3 = vpack.c.bf16 %v1765_v60, %v1761_v56 }
 0x1a5   : > { %1778 = vrcp.f32 %v800_v62  ;;  %v655_v4 = vadd.f32 %v1563_v0, %v2236_v2 }
 0x1a6   : > { %1780 = vpow2.f32 %v1431_v63  ;;  %1104 = vmatmul.mubr.bf16.gmra.mxu1 %v884_v3  ;;  %v1565_v5 = vpop.f32.mrf.mxu0  ;;  %v1767_v6 = vpop.eup %1766 }
 0x1a7   : > { %v1432_v7 = vmul.f32 -1.442695, %v655_v4  ;;  %v1566_v8 = vadd.f32 %v1565_v5, %v1564_v1  ;;  %1113 = vmatprep.mubr.bf16.mxu1 %v1979_v61  ;;  %v801_v9 = vadd.f32 1.0, %v1767_v6  ;;  %v1769_v11 = vpop.eup %1768 }
 0x1a8   : > { %v1567_v10 = vpop.f32.mrf.mxu0 }
 0x1a9   : > { %1782 = vpow2.f32 %v1432_v7  ;;  %v658_v12 = vadd.f32 %v1566_v8, %v2236_v2 }
 0x1aa   : > { %v1771_v13 = vpop.eup %1770  ;;  %v1568_v14 = vpop.f32.mrf.mxu0  ;;  %1784 = vrcp.f32 %v801_v9 }
 0x1ab   : > { %v1773_v15 = vpop.eup %1772  ;;  %v1433_v16 = vmul.f32 -1.442695, %v658_v12  ;;  %v1569_v17 = vadd.f32 %v1568_v14, %v1567_v10  ;;  %v885_v18 = vpack.c.bf16 %v1771_v13, %v1769_v11 }
 0x1ac   : > { %v802_v19 = vadd.f32 1.0, %v1773_v15  ;;  %v1570_v20 = vpop.f32.mrf.mxu0 }
 0x1ad   : > { %1786 = vpow2.f32 %v1433_v16  ;;  %v663_v21 = vadd.f32 %v1569_v17, %v2236_v2 }
 0x1ae   : > { %1788 = vrcp.f32 %v802_v19  ;;  %1114 = vmatmul.mubr.bf16.gmra.mxu1 %v885_v18  ;;  %v1571_v22 = vpop.f32.mrf.mxu0  ;;  %v1775_v23 = vpop.eup %1774 }
 0x1af   : > { %v1434_v24 = vmul.f32 -1.442695, %v663_v21  ;;  %v1572_v25 = vadd.f32 %v1571_v22, %v1570_v20  ;;  %1123 = vmatprep.mubr.bf16.mxu1 %v1979_v61  ;;  %v803_v26 = vadd.f32 1.0, %v1775_v23  ;;  %v1777_v28 = vpop.eup %1776 }
 0x1b0   : > { %v1573_v27 = vpop.f32.mrf.mxu0 }
 0x1b1   : > { %1790 = vpow2.f32 %v1434_v24  ;;  %v666_v29 = vadd.f32 %v1572_v25, %v2236_v2  ;;  %v911_v25 = vlaneseq }
 0x1b2   : > { %v1779_v30 = vpop.eup %1778  ;;  %v1574_v31 = vpop.f32.mrf.mxu0  ;;  %1792 = vrcp.f32 %v803_v26 }
 0x1b3   : > { %v1781_v32 = vpop.eup %1780  ;;  %v1435_v33 = vmul.f32 -1.442695, %v666_v29  ;;  %v1575_v34 = vadd.f32 %v1574_v31, %v1573_v27  ;;  %v886_v35 = vpack.c.bf16 %v1779_v30, %v1777_v28  ;;  %v912_v26 = vshrl.u32 %v911_v25, 7  ;;  %v909_v28 = vld [vmem:[%s2490_s4] sm:$0x3] }
 0x1b4   : > { %v804_v36 = vadd.f32 1.0, %v1781_v32  ;;  %v1576_v37 = vpop.f32.mrf.mxu0 }
 0x1b5   : > { %1794 = vpow2.f32 %v1435_v33  ;;  %v671_v38 = vadd.f32 %v1575_v34, %v2236_v2  ;;  %v913_v27 = vsub.s32 0, %v912_v26  ;;  %v917_v29 = vsub.s32 1, %v912_v26 }
 0x1b6   : > { %v1783_v39 = vpop.eup %1782  ;;  %1796 = vrcp.f32 %v804_v36  ;;  %1124 = vmatmul.mubr.bf16.gmra.mxu1 %v886_v35  ;;  %v1577_v40 = vpop.f32.mrf.mxu0 }
 0x1b7   : > { %v1436_v41 = vmul.f32 -1.442695, %v671_v38  ;;  %v1578_v42 = vadd.f32 %v1577_v40, %v1576_v37  ;;  %1133 = vmatprep.mubr.bf16.mxu1 %v1979_v61  ;;  %v805_v43 = vadd.f32 1.0, %v1783_v39  ;;  %v1785_v45 = vpop.eup %1784  ;;  %v2288_v30 = vrot.slane %v909_v28, %v913_v27 }
 0x1b8   : > { %v1579_v44 = vpop.f32.mrf.mxu0  ;;  %v2290_v31 = vrot.slane %v909_v28, %v917_v29 }
 0x1b9   : > { %v674_v46 = vadd.f32 %v1578_v42, %v2236_v2  ;;  %1798 = vpow2.f32 %v1436_v41 }
 0x1ba   : > { %v1787_v47 = vpop.eup %1786  ;;  %v1580_v48 = vpop.f32.mrf.mxu0  ;;  %1800 = vrcp.f32 %v805_v43 }
 0x1bb   : > { %v1789_v49 = vpop.eup %1788  ;;  %v806_v50 = vadd.f32 1.0, %v1787_v47  ;;  %v1437_v51 = vmul.f32 -1.442695, %v674_v46  ;;  %v1581_v52 = vadd.f32 %v1580_v48, %v1579_v44 }
 0x1bc   : > { %v1582_v53 = vpop.f32.mrf.mxu0  ;;  %v887_v54 = vpack.c.bf16 %v1789_v49, %v1785_v45 }
 0x1bd   : > { %1802 = vrcp.f32 %v806_v50  ;;  %v679_v55 = vadd.f32 %v1581_v52, %v2236_v2 }
 0x1be   : > { %v1791_v56 = vpop.eup %1790  ;;  %1804 = vpow2.f32 %v1437_v51  ;;  %1134 = vmatmul.mubr.bf16.gmra.mxu1 %v887_v54  ;;  %v1583_v57 = vpop.f32.mrf.mxu0 }
 0x1bf   : > { %v1438_v58 = vmul.f32 -1.442695, %v679_v55  ;;  %v1584_v59 = vadd.f32 %v1583_v57, %v1582_v53  ;;  %1143 = vmatprep.mubr.bf16.mxu1 %v1979_v61  ;;  %v807_v60 = vadd.f32 1.0, %v1791_v56  ;;  %v1793_v62 = vpop.eup %1792 }
 0x1c1   : > { %v682_v63 = vadd.f32 %v1584_v59, %v2236_v2  ;;  %1806 = vpow2.f32 %v1438_v58 }
 0x1c2   : > { %v1795_v0 = vpop.eup %1794  ;;  %1808 = vrcp.f32 %v807_v60 }
 0x1c3   : > { %v1797_v1 = vpop.eup %1796  ;;  %v808_v3 = vadd.f32 1.0, %v1795_v0  ;;  %v1439_v4 = vmul.f32 -1.442695, %v682_v63 }
 0x1c4   : > { %v888_v5 = vpack.c.bf16 %v1797_v1, %v1793_v62 }
 0x1c5   : > { %1810 = vrcp.f32 %v808_v3 }
 0x1c6   : > { %1812 = vpow2.f32 %v1439_v4  ;;  %1144 = vmatmul.mubr.bf16.gmra.mxu1 %v888_v5  ;;  %v1799_v6 = vpop.eup %1798 }
 0x1c7   : > { %1153 = vmatprep.mubr.bf16.mxu1 %v1979_v61  ;;  %v1801_v7 = vpop.eup %1800  ;;  %v809_v8 = vadd.f32 1.0, %v1799_v6 }
 0x1c9   : > { %1814 = vrcp.f32 %v809_v8 }
 0x1ca   : > { %v1803_v9 = vpop.eup %1802 }
 0x1cb   : > { %v1805_v10 = vpop.eup %1804  ;;  %v889_v11 = vpack.c.bf16 %v1803_v9, %v1801_v7 }
 0x1cc   : > { %v810_v12 = vadd.f32 1.0, %v1805_v10 }
 0x1ce   : > { %1816 = vrcp.f32 %v810_v12  ;;  %1154 = vmatmul.mubr.bf16.gmra.mxu1 %v889_v11  ;;  %v1807_v2 = vpop.eup %1806 }
 0x1cf   : > { %1163 = vmatprep.mubr.bf16.mxu1 %v1979_v61  ;;  %v1809_v13 = vpop.eup %1808  ;;  %v811_v14 = vadd.f32 1.0, %v1807_v2 }
 0x1d1   : > { %1818 = vrcp.f32 %v811_v14 }
 0x1d2   : > { %v1811_v15 = vpop.eup %1810 }
 0x1d3   : > { %v1813_v16 = vpop.eup %1812  ;;  %v890_v17 = vpack.c.bf16 %v1811_v15, %v1809_v13 }
 0x1d4   : > { %v812_v18 = vadd.f32 1.0, %v1813_v16 }
 0x1d6   : > { %1820 = vrcp.f32 %v812_v18  ;;  %1164 = vmatmul.mubr.bf16.gmra.mxu1 %v890_v17  ;;  %v1815_v19 = vpop.eup %1814 }
 0x1d7   : > { %1173 = vmatprep.mubr.bf16.mxu1 %v1979_v61 }
 0x1db   : > { %v1817_v20 = vpop.eup %1816 }
 0x1dc   : > { %v891_v21 = vpack.c.bf16 %v1817_v20, %v1815_v19 }
 0x1de   : > { %1174 = vmatmul.mubr.bf16.gmra.mxu1 %v891_v21  ;;  %v1819_v22 = vpop.eup %1818 }
 0x1df   : > { %1183 = vmatprep.mubr.bf16.mxu1 %v1979_v61 }
 0x1e3   : > { %v1821_v23 = vpop.eup %1820 }
 0x1e4   : > { %v892_v24 = vpack.c.bf16 %v1821_v23, %v1819_v22 }
 0x1e6   : > { %1184 = vmatmul.mubr.bf16.gmra.mxu1 %v892_v24 }
 0x22d   : > { %v1035_v32 = vpop.f32.mrf.mxu1 }
 0x22e   : > { %v1036_v33 = vadd.f32 %v1035_v32, %v2288_v30 }
 0x22f   : > { %v1037_v61 = vpop.f32.mrf.mxu1 }
 0x230   : > { %1194 = vst [vmem:[%s2295_s26] sm:$0xff] %v1036_v33  ;;  %v1038_v34 = vadd.f32 %v1037_v61, %v2290_v31 }
 0x231   : > { %v1039_v35 = vpop.f32.mrf.mxu1 }
 0x232   : > { %1195 = vst [vmem:[%s2295_s26 + $0x8] sm:$0xff] %v1038_v34  ;;  %v1040_v36 = vadd.f32 %v1039_v35, %v2288_v30 }
 0x233   : > { %v1041_v37 = vpop.f32.mrf.mxu1 }
 0x234   : > { %1196 = vst [vmem:[%s2295_s26 + $0x10] sm:$0xff] %v1040_v36  ;;  %v1042_v38 = vadd.f32 %v1041_v37, %v2290_v31 }
 0x235   : > { %v1045_v39 = vpop.f32.mrf.mxu1 }
 0x236   : > { %1197 = vst [vmem:[%s2295_s26 + $0x18] sm:$0xff] %v1042_v38  ;;  %v1046_v40 = vadd.f32 %v1045_v39, %v2288_v30 }
 0x237   : > { %v1047_v41 = vpop.f32.mrf.mxu1 }
 0x238   : > { %1198 = vst [vmem:[%s2295_s26 + $0x20] sm:$0xff] %v1046_v40  ;;  %v1048_v42 = vadd.f32 %v1047_v41, %v2290_v31 }
 0x239   : > { %v1049_v43 = vpop.f32.mrf.mxu1 }
 0x23a   : > { %1199 = vst [vmem:[%s2295_s26 + $0x28] sm:$0xff] %v1048_v42  ;;  %v1050_v44 = vadd.f32 %v1049_v43, %v2288_v30 }
 0x23b   : > { %v1051_v45 = vpop.f32.mrf.mxu1 }
 0x23c   : > { %1200 = vst [vmem:[%s2295_s26 + $0x30] sm:$0xff] %v1050_v44  ;;  %v1052_v46 = vadd.f32 %v1051_v45, %v2290_v31 }
 0x23e   : > { %1201 = vst [vmem:[%s2295_s26 + $0x38] sm:$0xff] %v1052_v46  ;;  %v1055_v47 = vpop.f32.mrf.mxu1 }
 0x23f   : > { %v1056_v48 = vadd.f32 %v1055_v47, %v2288_v30 }
 0x240   : > { %v1057_v49 = vpop.f32.mrf.mxu1 }
 0x241   : > { %1202 = vst [vmem:[%s2295_s26 + $0x40] sm:$0xff] %v1056_v48  ;;  %v1058_v50 = vadd.f32 %v1057_v49, %v2290_v31 }
 0x242   : > { %v1059_v51 = vpop.f32.mrf.mxu1 }
 0x243   : > { %1203 = vst [vmem:[%s2295_s26 + $0x48] sm:$0xff] %v1058_v50  ;;  %v1060_v52 = vadd.f32 %v1059_v51, %v2288_v30 }
 0x244   : > { %v1061_v53 = vpop.f32.mrf.mxu1 }
 0x245   : > { %1204 = vst [vmem:[%s2295_s26 + $0x50] sm:$0xff] %v1060_v52  ;;  %v1062_v54 = vadd.f32 %v1061_v53, %v2290_v31 }
 0x246   : > { %v1065_v55 = vpop.f32.mrf.mxu1 }
 0x247   : > { %1205 = vst [vmem:[%s2295_s26 + $0x58] sm:$0xff] %v1062_v54  ;;  %v1066_v56 = vadd.f32 %v1065_v55, %v2288_v30 }
 0x248   : > { %v1067_v57 = vpop.f32.mrf.mxu1 }
 0x249   : > { %1206 = vst [vmem:[%s2295_s26 + $0x60] sm:$0xff] %v1066_v56  ;;  %v1068_v58 = vadd.f32 %v1067_v57, %v2290_v31 }
 0x24a   : > { %v1069_v59 = vpop.f32.mrf.mxu1 }
 0x24b   : > { %1207 = vst [vmem:[%s2295_s26 + $0x68] sm:$0xff] %v1068_v58  ;;  %v1070_v60 = vadd.f32 %v1069_v59, %v2288_v30 }
 0x24c   : > { %v1071_v62 = vpop.f32.mrf.mxu1 }
 0x24d   : > { %1208 = vst [vmem:[%s2295_s26 + $0x70] sm:$0xff] %v1070_v60  ;;  %v1072_v63 = vadd.f32 %v1071_v62, %v2290_v31 }
 0x24e   : > { %v1075_v0 = vpop.f32.mrf.mxu1 }
 0x24f   : > { %1209 = vst [vmem:[%s2295_s26 + $0x78] sm:$0xff] %v1072_v63  ;;  %v1076_v1 = vadd.f32 %v1075_v0, %v2288_v30 }
 0x250   : > { %v1077_v3 = vpop.f32.mrf.mxu1 }
 0x251   : > { %1210 = vst [vmem:[%s2295_s26 + $0x80] sm:$0xff] %v1076_v1  ;;  %v1078_v4 = vadd.f32 %v1077_v3, %v2290_v31 }
 0x252   : > { %v1079_v5 = vpop.f32.mrf.mxu1 }
 0x253   : > { %1211 = vst [vmem:[%s2295_s26 + $0x88] sm:$0xff] %v1078_v4  ;;  %v1080_v6 = vadd.f32 %v1079_v5, %v2288_v30 }
 0x254   : > { %v1081_v7 = vpop.f32.mrf.mxu1 }
 0x255   : > { %1212 = vst [vmem:[%s2295_s26 + $0x90] sm:$0xff] %v1080_v6  ;;  %v1082_v8 = vadd.f32 %v1081_v7, %v2290_v31 }
 0x256   : > { %v1085_v9 = vpop.f32.mrf.mxu1 }
 0x257   : > { %1213 = vst [vmem:[%s2295_s26 + $0x98] sm:$0xff] %v1082_v8  ;;  %v1086_v10 = vadd.f32 %v1085_v9, %v2288_v30 }
 0x258   : > { %v1087_v11 = vpop.f32.mrf.mxu1 }
 0x259   : > { %1214 = vst [vmem:[%s2295_s26 + $0xa0] sm:$0xff] %v1086_v10  ;;  %v1088_v12 = vadd.f32 %v1087_v11, %v2290_v31 }
 0x25a   : > { %v1089_v2 = vpop.f32.mrf.mxu1 }
 0x25b   : > { %1215 = vst [vmem:[%s2295_s26 + $0xa8] sm:$0xff] %v1088_v12  ;;  %v1090_v13 = vadd.f32 %v1089_v2, %v2288_v30 }
 0x25c   : > { %v1091_v14 = vpop.f32.mrf.mxu1 }
 0x25d   : > { %1216 = vst [vmem:[%s2295_s26 + $0xb0] sm:$0xff] %v1090_v13  ;;  %v1092_v15 = vadd.f32 %v1091_v14, %v2290_v31 }
 0x25e   : > { %v1095_v16 = vpop.f32.mrf.mxu1 }
 0x25f   : > { %1217 = vst [vmem:[%s2295_s26 + $0xb8] sm:$0xff] %v1092_v15  ;;  %v1096_v17 = vadd.f32 %v1095_v16, %v2288_v30 }
 0x260   : > { %v1097_v18 = vpop.f32.mrf.mxu1 }
 0x261   : > { %1218 = vst [vmem:[%s2295_s26 + $0xc0] sm:$0xff] %v1096_v17  ;;  %v1098_v19 = vadd.f32 %v1097_v18, %v2290_v31 }
 0x262   : > { %v1099_v20 = vpop.f32.mrf.mxu1 }
 0x263   : > { %1219 = vst [vmem:[%s2295_s26 + $0xc8] sm:$0xff] %v1098_v19  ;;  %v1100_v21 = vadd.f32 %v1099_v20, %v2288_v30 }
 0x264   : > { %v1101_v22 = vpop.f32.mrf.mxu1 }
 0x265   : > { %1220 = vst [vmem:[%s2295_s26 + $0xd0] sm:$0xff] %v1100_v21  ;;  %v1102_v23 = vadd.f32 %v1101_v22, %v2290_v31 }
 0x266   : > { %v1105_v24 = vpop.f32.mrf.mxu1 }
 0x267   : > { %1221 = vst [vmem:[%s2295_s26 + $0xd8] sm:$0xff] %v1102_v23  ;;  %v1106_v25 = vadd.f32 %v1105_v24, %v2288_v30 }
 0x268   : > { %v1107_v26 = vpop.f32.mrf.mxu1 }
 0x269   : > { %1222 = vst [vmem:[%s2295_s26 + $0xe0] sm:$0xff] %v1106_v25  ;;  %v1108_v27 = vadd.f32 %v1107_v26, %v2290_v31 }
 0x26a   : > { %v1109_v28 = vpop.f32.mrf.mxu1 }
 0x26b   : > { %1223 = vst [vmem:[%s2295_s26 + $0xe8] sm:$0xff] %v1108_v27  ;;  %v1110_v29 = vadd.f32 %v1109_v28, %v2288_v30 }
 0x26c   : > { %v1111_v32 = vpop.f32.mrf.mxu1 }
 0x26d   : > { %1224 = vst [vmem:[%s2295_s26 + $0xf0] sm:$0xff] %v1110_v29  ;;  %v1112_v33 = vadd.f32 %v1111_v32, %v2290_v31 }
 0x26e   : > { %v1115_v61 = vpop.f32.mrf.mxu1 }
 0x26f   : > { %1225 = vst [vmem:[%s2295_s26 + $0xf8] sm:$0xff] %v1112_v33  ;;  %v1116_v34 = vadd.f32 %v1115_v61, %v2288_v30 }
 0x270   : > { %v1117_v35 = vpop.f32.mrf.mxu1 }
 0x271   : > { %1226 = vst [vmem:[%s2295_s26 + $0x100] sm:$0xff] %v1116_v34  ;;  %v1118_v36 = vadd.f32 %v1117_v35, %v2290_v31 }
 0x272   : > { %v1119_v37 = vpop.f32.mrf.mxu1 }
 0x273   : > { %1227 = vst [vmem:[%s2295_s26 + $0x108] sm:$0xff] %v1118_v36  ;;  %v1120_v38 = vadd.f32 %v1119_v37, %v2288_v30 }
 0x274   : > { %v1121_v39 = vpop.f32.mrf.mxu1 }
 0x275   : > { %1228 = vst [vmem:[%s2295_s26 + $0x110] sm:$0xff] %v1120_v38  ;;  %v1122_v40 = vadd.f32 %v1121_v39, %v2290_v31 }
 0x276   : > { %v1125_v41 = vpop.f32.mrf.mxu1 }
 0x277   : > { %1229 = vst [vmem:[%s2295_s26 + $0x118] sm:$0xff] %v1122_v40  ;;  %v1126_v42 = vadd.f32 %v1125_v41, %v2288_v30 }
 0x278   : > { %v1127_v43 = vpop.f32.mrf.mxu1 }
 0x279   : > { %1230 = vst [vmem:[%s2295_s26 + $0x120] sm:$0xff] %v1126_v42  ;;  %v1128_v44 = vadd.f32 %v1127_v43, %v2290_v31 }
 0x27a   : > { %v1129_v45 = vpop.f32.mrf.mxu1 }
 0x27b   : > { %1231 = vst [vmem:[%s2295_s26 + $0x128] sm:$0xff] %v1128_v44  ;;  %v1130_v46 = vadd.f32 %v1129_v45, %v2288_v30 }
 0x27c   : > { %v1131_v47 = vpop.f32.mrf.mxu1 }
 0x27d   : > { %1232 = vst [vmem:[%s2295_s26 + $0x130] sm:$0xff] %v1130_v46  ;;  %v1132_v48 = vadd.f32 %v1131_v47, %v2290_v31 }
 0x27e   : > { %v1135_v49 = vpop.f32.mrf.mxu1 }
 0x27f   : > { %1233 = vst [vmem:[%s2295_s26 + $0x138] sm:$0xff] %v1132_v48  ;;  %v1136_v50 = vadd.f32 %v1135_v49, %v2288_v30 }
 0x280   : > { %v1137_v51 = vpop.f32.mrf.mxu1 }
 0x281   : > { %1234 = vst [vmem:[%s2295_s26 + $0x140] sm:$0xff] %v1136_v50  ;;  %v1138_v52 = vadd.f32 %v1137_v51, %v2290_v31 }
 0x282   : > { %v1139_v53 = vpop.f32.mrf.mxu1 }
 0x283   : > { %1235 = vst [vmem:[%s2295_s26 + $0x148] sm:$0xff] %v1138_v52  ;;  %v1140_v54 = vadd.f32 %v1139_v53, %v2288_v30 }
 0x284   : > { %v1141_v55 = vpop.f32.mrf.mxu1 }
 0x285   : > { %1236 = vst [vmem:[%s2295_s26 + $0x150] sm:$0xff] %v1140_v54  ;;  %v1142_v56 = vadd.f32 %v1141_v55, %v2290_v31 }
 0x286   : > { %v1145_v57 = vpop.f32.mrf.mxu1 }
 0x287   : > { %1237 = vst [vmem:[%s2295_s26 + $0x158] sm:$0xff] %v1142_v56  ;;  %v1146_v58 = vadd.f32 %v1145_v57, %v2288_v30 }
 0x288   : > { %v1147_v59 = vpop.f32.mrf.mxu1 }
 0x289   : > { %1238 = vst [vmem:[%s2295_s26 + $0x160] sm:$0xff] %v1146_v58  ;;  %v1148_v60 = vadd.f32 %v1147_v59, %v2290_v31 }
 0x28a   : > { %v1149_v62 = vpop.f32.mrf.mxu1 }
 0x28b   : > { %1239 = vst [vmem:[%s2295_s26 + $0x168] sm:$0xff] %v1148_v60  ;;  %v1150_v63 = vadd.f32 %v1149_v62, %v2288_v30 }
 0x28c   : > { %v1151_v0 = vpop.f32.mrf.mxu1 }
 0x28d   : > { %1240 = vst [vmem:[%s2295_s26 + $0x170] sm:$0xff] %v1150_v63  ;;  %v1152_v1 = vadd.f32 %v1151_v0, %v2290_v31 }
 0x28e   : > { %v1155_v3 = vpop.f32.mrf.mxu1 }
 0x28f   : > { %1241 = vst [vmem:[%s2295_s26 + $0x178] sm:$0xff] %v1152_v1  ;;  %v1156_v4 = vadd.f32 %v1155_v3, %v2288_v30 }
 0x290   : > { %v1157_v5 = vpop.f32.mrf.mxu1 }
 0x291   : > { %1242 = vst [vmem:[%s2295_s26 + $0x180] sm:$0xff] %v1156_v4  ;;  %v1158_v6 = vadd.f32 %v1157_v5, %v2290_v31 }
 0x292   : > { %v1159_v7 = vpop.f32.mrf.mxu1 }
 0x293   : > { %1243 = vst [vmem:[%s2295_s26 + $0x188] sm:$0xff] %v1158_v6  ;;  %v1160_v8 = vadd.f32 %v1159_v7, %v2288_v30 }
 0x294   : > { %v1161_v9 = vpop.f32.mrf.mxu1 }
 0x295   : > { %1244 = vst [vmem:[%s2295_s26 + $0x190] sm:$0xff] %v1160_v8  ;;  %v1162_v10 = vadd.f32 %v1161_v9, %v2290_v31 }
 0x296   : > { %v1165_v11 = vpop.f32.mrf.mxu1 }
 0x297   : > { %1245 = vst [vmem:[%s2295_s26 + $0x198] sm:$0xff] %v1162_v10  ;;  %v1166_v12 = vadd.f32 %v1165_v11, %v2288_v30 }
 0x298   : > { %v1167_v2 = vpop.f32.mrf.mxu1 }
 0x299   : > { %1246 = vst [vmem:[%s2295_s26 + $0x1a0] sm:$0xff] %v1166_v12  ;;  %v1168_v13 = vadd.f32 %v1167_v2, %v2290_v31 }
 0x29a   : > { %v1169_v14 = vpop.f32.mrf.mxu1 }
 0x29b   : > { %1247 = vst [vmem:[%s2295_s26 + $0x1a8] sm:$0xff] %v1168_v13  ;;  %v1170_v15 = vadd.f32 %v1169_v14, %v2288_v30 }
 0x29c   : > { %v1171_v16 = vpop.f32.mrf.mxu1 }
 0x29d   : > { %1248 = vst [vmem:[%s2295_s26 + $0x1b0] sm:$0xff] %v1170_v15  ;;  %v1172_v17 = vadd.f32 %v1171_v16, %v2290_v31 }
 0x29e   : > { %v1175_v18 = vpop.f32.mrf.mxu1 }
 0x29f   : > { %1249 = vst [vmem:[%s2295_s26 + $0x1b8] sm:$0xff] %v1172_v17  ;;  %v1176_v19 = vadd.f32 %v1175_v18, %v2288_v30 }
 0x2a0   : > { %v1177_v20 = vpop.f32.mrf.mxu1 }
 0x2a1   : > { %1250 = vst [vmem:[%s2295_s26 + $0x1c0] sm:$0xff] %v1176_v19  ;;  %v1178_v21 = vadd.f32 %v1177_v20, %v2290_v31 }
 0x2a2   : > { %v1179_v22 = vpop.f32.mrf.mxu1 }
 0x2a3   : > { %1251 = vst [vmem:[%s2295_s26 + $0x1c8] sm:$0xff] %v1178_v21  ;;  %v1180_v23 = vadd.f32 %v1179_v22, %v2288_v30 }
 0x2a4   : > { %v1181_v24 = vpop.f32.mrf.mxu1 }
 0x2a5   : > { %1252 = vst [vmem:[%s2295_s26 + $0x1d0] sm:$0xff] %v1180_v23  ;;  %v1182_v25 = vadd.f32 %v1181_v24, %v2290_v31 }
 0x2a6   : > { %v1185_v26 = vpop.f32.mrf.mxu1 }
 0x2a7   : > { %1253 = vst [vmem:[%s2295_s26 + $0x1d8] sm:$0xff] %v1182_v25  ;;  %v1186_v27 = vadd.f32 %v1185_v26, %v2288_v30 }
 0x2a8   : > { %v1187_v28 = vpop.f32.mrf.mxu1 }
 0x2a9   : > { %1254 = vst [vmem:[%s2295_s26 + $0x1e0] sm:$0xff] %v1186_v27  ;;  %v1188_v29 = vadd.f32 %v1187_v28, %v2290_v31 }
 0x2aa   : > { %v1189_v32 = vpop.f32.mrf.mxu1 }
 0x2ab   : > { %1255 = vst [vmem:[%s2295_s26 + $0x1e8] sm:$0xff] %v1188_v29  ;;  %v1190_v33 = vadd.f32 %v1189_v32, %v2288_v30  ;;  %1265 = sbr.rel (!%p2503_p10) target bundleno = 715 (0x2cb), region = 56 }
 0x2ac   : > { %v1191_v61 = vpop.f32.mrf.mxu1 }
 0x2ad   : > { %1256 = vst [vmem:[%s2295_s26 + $0x1f0] sm:$0xff] %v1190_v33  ;;  %v1192_v34 = vadd.f32 %v1191_v61, %v2290_v31 }
 0x2af   : > { %1257 = vst [vmem:[%s2295_s26 + $0x1f8] sm:$0xff] %v1192_v34 }
 0x2b0   : > { %s2512_s28 = smov (!%p1268_p1, %s1267_s28), 32 }
 0x2b1   : > { %s2428_s23 = sshll.u32 %s2512_s28, 8 }
 0x2b2   : > { %s1273_s25 = ssub.s32 8192, %s2428_s23 }
 0x2b3   : > { %1274 = vsyncadd %s1259_s8, %s1273_s25  ;;  %p1460_p3 = scmp.ne.s32.totalorder %s2428_s23, 0  ;;  %s1472_s30 = sshll.u32 %s2034_s22, 13 }
 0x2b4   : > { %s2438_s14 = scalar_lea.hbm %s2491_s5, %s1472_s30  ;;  %s1280_s15 = sshll.u32 %s2295_s26, 4  ;;  %s2441_s15 = int_to_ptr.vmem [resolvable:$true] %s1280_s15 }
 0x2b5   : > { %s1900_s12 = scalar_lea.vmem %s2441_s15, %s2428_s23  ;;  %s1980_s29 = smov [#allocation8]  }
 0x2b6   : > { %p1901_p7 = scmp.ne.s32.totalorder %s2441_s15, %s1900_s12  ;;  %s1904_s7 = sshll.u32 %s1980_s29, 4  ;;  %s1905_s7 = int_to_ptr.vmem [resolvable:$false] %s1904_s7 }
 0x2b7   : > { %s1906_s22 = scalar_lea.vmem %s1905_s7, 16384  ;;  %p1907_p4 = scmp.lt.s32.totalorder %s2441_s15, %s1905_s7 }
 0x2b8   : > { %p1902_p9 = pnand %p1901_p7, %p1460_p3  ;;  %p1908_p6 = scmp.lt.s32.totalorder %s1906_s22, %s1900_s12 }
 0x2ba   : > { %p1903_p12 = pneg %p1902_p9  ;;  %p1909_p11 = por %p1908_p6, %p1907_p4 }
 0x2bc   : > { %p1910_p0 = pnand %p1909_p11, %p1903_p12 }
 0x2be   : > { %1913 = shalt.err (!%p1910_p0)
}
 0x2bf   : > { %s1914_s10 = scalar_lea.hbm %s2438_s14, %s2428_s23  ;;  %s1918_s17 = scalar_lea.hbm %s2491_s5, 16128 }
 0x2c0   : > { %p1915_p2 = scmp.ne.s32.totalorder %s2438_s14, %s1914_s10  ;;  %p1919_p10 = scmp.lt.s32.totalorder %s2438_s14, %s2491_s5 }
 0x2c1   : > { %p1920_p1 = scmp.lt.s32.totalorder %s1918_s17, %s1914_s10 }
 0x2c2   : > { %p1916_p5 = pnand %p1915_p2, %p1460_p3 }
 0x2c3   : > { %p1921_p7 = por %p1920_p1, %p1919_p10 }
 0x2c4   : > { %p1917_p13 = pneg %p1916_p5 }
 0x2c6   : > { %p1922_p9 = pnand %p1921_p7, %p1917_p13 }
 0x2c8   : > { %1925 = shalt.err (!%p1922_p9)
}
 0x2c9   : > { %s1981_s30 = smov 256   ;;  %s1982_s11 = smov 16  }
 0x2ca   : > { %1286 = dma.vmem_to_hbm [thread:$0]  (%p1460_p3), %s2441_s15, %s2428_s23, %s2438_s14, %s1259_s8, %s1981_s30, %s1981_s30, %s1982_s11  }
 0x2cb PF: > { %s1295_s9 = sand.u32 1, %s1956_s18   ;;  %p2504_p12 = scmp.ne.s32.totalorder %s2497_s6, 0 }
 0x2cc   : > { %s1296_s12 = scalar_lea.sflag [#allocation4], %s1295_s9 }
 0x2cd   : > { %p1603_p4 = pnand %p1376_p8, %p2504_p12 }
 0x2cf   : > { %p1604_p6 = pneg %p1603_p4 }
 0x2d1   : > { %1951 = dma.done.wait (%p1604_p6), %s1296_s12, 8192  }
 0x2d2   : > { %1953 = vsyncadd (%p1604_p6), %s1296_s12, 4294959104  ;;  %p19_p11 = scmp.ge.s32.totalorder %s2038_s24, 4   ;;  %s2505_s18 = smov %s1960_s19 }
 0x2d3   : > { %s2506_s19 = smov %s1964_s20  ;;  %s2507_s20 = smov %s2050_s27 }
 0x2d4   : > { %s2508_s21 = smov %s2038_s24  ;;  %21 = sbr.rel (!%p19_p11) target bundleno = 6 (0x6), region = 93 }
 0x2d9   :  { %1301 = vsyncpa [#allocation3], 1 }
 0x2da   :  { %1303 = vsyncpa [#allocation3 + $0x1], 1 }
 0x2db   :  { %1304 = vsyncpa [#allocation6], 1 }
 0x2dc   :  { %1305 = vsyncpa [#allocation4], 1 }
 0x2dd   :  { %1307 = vsyncpa [#allocation4 + $0x1], 1 }

</bundles_post_ra>
